<compile_context>
chip_gen: v6e
topology: v6e:2x2x1
jax: 0.10.0
libtpu: 0.0.40
codegen_flags: <defaults>
</compile_context>

<pallas_src>
import jax
import jax.numpy as jnp
import numpy as np
from jax.experimental import pallas as pl
from jax.experimental.pallas import tpu as pltpu

# ----------------------- forward-consistent config -----------------------
TIME_INTERVALS = 8
NUM_WEATHER_VARS = 4
NUM_MGMT_VARS = 2            # total management vars present in X
NUM_MGMT_THIS_CROP = 1       # = len(progress_indices) / time_intervals
NUM_SOIL_VARS = 4
SOIL_DEPTHS = 6              # -> conv chain: k3, k3, k2 (no avg-pool branch)
NUM_EXTRA = 7                # num_extra_vars + len(output_names)
Z_DIM = 32
BATCH = 8

N_W = TIME_INTERVALS * NUM_WEATHER_VARS          # 32
N_M = TIME_INTERVALS * NUM_MGMT_VARS             # 16
N_S = SOIL_DEPTHS * NUM_SOIL_VARS                # 24
N_FEAT = N_W + N_M + N_S + NUM_EXTRA             # 79

# columns of X holding the management vars used by this crop (first mgmt var)
PROGRESS_INDICES = jnp.arange(N_W, N_W + NUM_MGMT_THIS_CROP * TIME_INTERVALS)

RNN_IN = NUM_WEATHER_VARS + NUM_MGMT_THIS_CROP   # 5
RNN_IN_PAD = 8                                   # pad LSTM input features to 8 lanes
WM_FC_OUT = 80
S_FC_OUT = 40
OUT_DIM = WM_FC_OUT + S_FC_OUT + NUM_EXTRA       # 127
KERNEL_OUT = 128                                 # lane-padded kernel output width

# conv output lengths for soil_depths=6: 6 -k3-> 4 -k3-> 2 -k2-> 1
L1_OUT, L2_OUT = 4, 2
C1, C2, C3 = 16, 32, 64

LANES = 128

# --------------------- weight-slab layout (one DMA for all params) ---------------------
# Every section starts on an 8-row boundary and is padded to 128 lanes.
_SECTIONS = [
    ("w_ih", 8),        # (RNN_IN_PAD, 4Z)       LSTM input weights (rows 5:8 zero)
    ("w_hh", 32),       # (Z, 4Z)                LSTM hidden weights
    ("b_lstm", 8),      # (1, 4Z)                b_ih + b_hh
    ("w1", 24),         # (24, 128)              conv1 block-Toeplitz (cols 64: zero)
    ("b1", 8),          # (1, 128)               conv1 bias tiled per position
    ("w2", 128),        # (128, 128)             conv2 block-Toeplitz (rows/cols 64: zero)
    ("b2", 8),
    ("w3", 128),        # (128, 128)             conv3 block-Toeplitz
    ("b3", 8),
    ("w_out_h", 32),    # (Z, 128)               wm_fc weights placed in lanes 0:80
    ("w_out_s", 128),   # (128, 128)             s_fc weights placed in lanes 80:120
    ("b_out", 8),       # (1, 128)               [b_wmfc | b_sfc | 0]
]
_OFF = {}
_o = 0
for _name, _rows in _SECTIONS:
    _OFF[_name] = _o
    _o += _rows
SLAB_ROWS = _o  # 520


def _dot(a, b):
    # default precision (single MXU pass), f32 accumulation
    return jax.lax.dot_general(a, b, (((1,), (0,)), ((), ())),
                               preferred_element_type=jnp.float32)


# ------------------------------- Pallas kernel ----------------------------------
def single_year_rnn_kernel(x_ref, xs_ref, w_ref, out_ref):
    B = out_ref.shape[0]
    Z = Z_DIM

    # static, 8-row-aligned, full-lane slices of the weight slab
    w_ih = w_ref[_OFF["w_ih"]:_OFF["w_ih"] + RNN_IN_PAD, :]        # (8, 128)
    w_hh = w_ref[_OFF["w_hh"]:_OFF["w_hh"] + Z, :]                 # (32, 128)
    b_lstm = w_ref[_OFF["b_lstm"]:_OFF["b_lstm"] + 1, :]           # (1, 128)
    w1 = w_ref[_OFF["w1"]:_OFF["w1"] + N_S, :]                     # (24, 128)
    b1 = w_ref[_OFF["b1"]:_OFF["b1"] + 1, :]
    w2 = w_ref[_OFF["w2"]:_OFF["w2"] + 128, :]                     # (128, 128)
    b2 = w_ref[_OFF["b2"]:_OFF["b2"] + 1, :]
    w3 = w_ref[_OFF["w3"]:_OFF["w3"] + 128, :]                     # (128, 128)
    b3 = w_ref[_OFF["b3"]:_OFF["b3"] + 1, :]
    w_oh = w_ref[_OFF["w_out_h"]:_OFF["w_out_h"] + Z, :]           # (32, 128)
    w_os = w_ref[_OFF["w_out_s"]:_OFF["w_out_s"] + 128, :]         # (128, 128)
    b_out = w_ref[_OFF["b_out"]:_OFF["b_out"] + 1, :]

    # ---------------- within-year LSTM (batch_first, 1 layer) ----------------
    # hoisted input projection: one matmul for all T steps (time-major rows)
    x = x_ref[...]                                 # (T*B, 8)
    xproj = _dot(x, w_ih) + b_lstm                 # (T*B, 4Z)

    h = jnp.zeros((B, Z), jnp.float32)
    c = jnp.zeros((B, Z), jnp.float32)
    for t in range(TIME_INTERVALS):                # static unroll; serial recurrence
        gates = xproj[t * B:(t + 1) * B, :] + _dot(h, w_hh)        # (B, 4Z)
        # gates packed as (i, f, o, g): one sigmoid over 3Z lanes, one tanh over Z lanes
        sig = jax.nn.sigmoid(gates[:, :3 * Z])
        g_g = jnp.tanh(gates[:, 3 * Z:])
        i_g = sig[:, :Z]
        f_g = sig[:, Z:2 * Z]
        o_g = sig[:, 2 * Z:3 * Z]
        c = f_g * c + i_g * g_g
        h = o_g * jnp.tanh(c)

    # ---------------- soil conv path: three block-Toeplitz matmuls ----------------
    xs = xs_ref[...]                                               # (B, 24)
    h1 = jnp.maximum(_dot(xs, w1) + b1, 0.0)                       # (B, 128); lanes 64: == 0
    h2 = jnp.maximum(_dot(h1, w2) + b2, 0.0)                       # (B, 128)
    h3 = jnp.maximum(_dot(h2, w3) + b3, 0.0)                       # (B, 128)

    # ---------------- fused wm_fc + s_fc into one 128-lane output ----------------
    # lanes [0:80] = ReLU(h @ w_wmfc + b_wmfc), lanes [80:120] = ReLU(h3 @ w_sfc + b_sfc)
    out_ref[...] = jnp.maximum(_dot(h, w_oh) + _dot(h3, w_os) + b_out, 0.0)


# ------------------------------- wrapper / glue ----------------------------------
def init_params(key):
    ks = jax.random.split(key, 13)

    def u(k, shape, scale=0.1):
        return jax.random.uniform(k, shape, jnp.float32, -scale, scale)

    return {
        # LSTM weights stored pre-transposed to (in_features, 4*z_dim), gate order (i,f,g,o)
        "w_ih": u(ks[0], (RNN_IN, 4 * Z_DIM)),
        "w_hh": u(ks[1], (Z_DIM, 4 * Z_DIM)),
        "b_lstm": u(ks[2], (1, 4 * Z_DIM)),      # b_ih + b_hh combined
        "w_wmfc": u(ks[3], (Z_DIM, WM_FC_OUT)),
        "b_wmfc": u(ks[4], (1, WM_FC_OUT)),
        # Conv1d weights in PyTorch layout (C_out, C_in, k)
        "w_conv1": u(ks[5], (C1, NUM_SOIL_VARS, 3)),
        "b_conv1": u(ks[6], (1, C1)),
        "w_conv2": u(ks[7], (C2, C1, 3)),
        "b_conv2": u(ks[8], (1, C2)),
        "w_conv3": u(ks[9], (C3, C2, 2)),
        "b_conv3": u(ks[10], (1, C3)),
        "w_sfc": u(ks[11], (C3, S_FC_OUT)),
        "b_sfc": u(ks[12], (1, S_FC_OUT)),
    }


def _split_features(X):
    """Feature slicing exactly as in the PyTorch forward (no_management == False branch)."""
    B = X.shape[0]
    X_w = X[:, :N_W]
    X_m = X[:, PROGRESS_INDICES]
    X_wm = jnp.concatenate([X_w, X_m], axis=1)
    X_wm = X_wm.reshape(B, RNN_IN, TIME_INTERVALS).transpose(0, 2, 1)   # (B, T, RNN_IN)
    X_s_flat = X[:, N_W + N_M:N_W + N_M + N_S]                          # (B, 24), channel-major
    X_extra = X[:, N_W + N_M + N_S:]
    return X_wm, X_s_flat, X_extra


def _pack_lstm_input(X_wm):
    """(B, T, RNN_IN) -> time-major (T*B, 8) with zero-padded feature lanes."""
    B, T, F = X_wm.shape
    x_tm = jnp.transpose(X_wm, (1, 0, 2)).reshape(T * B, F)
    return jnp.pad(x_tm, ((0, 0), (0, RNN_IN_PAD - F)))


def _reorder_gates(w):
    """Last-dim packed gates (i,f,g,o) -> (i,f,o,g)."""
    Z = Z_DIM
    return jnp.concatenate(
        [w[..., :2 * Z], w[..., 3 * Z:4 * Z], w[..., 2 * Z:3 * Z]], axis=-1)


def _conv1_block_toeplitz(w, in_len, out_len):
    """Input flat layout lane = ci*in_len + d (channel-major, as sliced from X)."""
    C_out, C_in, K = w.shape
    wp = jnp.transpose(w, (1, 2, 0))                    # (C_in, K, C_out)
    cols = []
    for p in range(out_len):
        b = jnp.pad(wp, ((0, 0), (p, in_len - K - p), (0, 0)))
        cols.append(b.reshape(C_in * in_len, C_out))
    return jnp.concatenate(cols, axis=1)                # (C_in*in_len, out_len*C_out)


def _convN_block_toeplitz(w, in_len, out_len):
    """Input flat layout lane = q*C_in + ci (position-major, matches previous conv output)."""
    C_out, C_in, K = w.shape
    wp = jnp.transpose(w, (2, 1, 0))                    # (K, C_in, C_out)
    cols = []
    for p in range(out_len):
        b = jnp.pad(wp, ((p, in_len - K - p), (0, 0), (0, 0)))
        cols.append(b.reshape(in_len * C_in, C_out))
    return jnp.concatenate(cols, axis=1)                # (in_len*C_in, out_len*C_out)


def build_weight_slab(params):
    """Pack every weight/bias into one (SLAB_ROWS, 128) f32 slab (single DMA)."""
    def pad_block(a, rows):
        a = jnp.atleast_2d(jnp.asarray(a, jnp.float32))
        return jnp.pad(a, ((0, rows - a.shape[0]), (0, LANES - a.shape[1])))

    arrays = {
        "w_ih": _reorder_gates(params["w_ih"]),                      # (5, 128)
        "w_hh": _reorder_gates(params["w_hh"]),                      # (32, 128)
        "b_lstm": _reorder_gates(params["b_lstm"]),                  # (1, 128)
        "w1": _conv1_block_toeplitz(params["w_conv1"], SOIL_DEPTHS, L1_OUT),   # (24, 64)
        "b1": jnp.tile(params["b_conv1"].reshape(-1), L1_OUT),                 # (64,)
        "w2": _convN_block_toeplitz(params["w_conv2"], L1_OUT, L2_OUT),        # (64, 64)
        "b2": jnp.tile(params["b_conv2"].reshape(-1), L2_OUT),                 # (64,)
        "w3": _convN_block_toeplitz(params["w_conv3"], L2_OUT, 1),             # (64, 64)
        "b3": params["b_conv3"].reshape(-1),                                   # (64,)
        # fused output projection: lanes [0:80] <- wm_fc(h); lanes [80:120] <- s_fc(h3)
        "w_out_h": jnp.pad(params["w_wmfc"], ((0, 0), (0, LANES - WM_FC_OUT))),
        "w_out_s": jnp.pad(params["w_sfc"],
                           ((0, 0), (WM_FC_OUT, LANES - WM_FC_OUT - S_FC_OUT))),
        "b_out": jnp.concatenate(
            [params["b_wmfc"].reshape(-1), params["b_sfc"].reshape(-1),
             jnp.zeros((LANES - WM_FC_OUT - S_FC_OUT,), jnp.float32)]),
    }
    return jnp.concatenate([pad_block(arrays[name], rows) for name, rows in _SECTIONS],
                           axis=0)


def single_year_rnn_forward(X, params):
    B = X.shape[0]
    X_wm, X_s_flat, X_extra = _split_features(X)
    x_lstm = _pack_lstm_input(X_wm)                  # (T*B, 8)
    w_slab = build_weight_slab(params)               # (520, 128)

    vmem = pl.BlockSpec(memory_space=pltpu.MemorySpace.VMEM)
    # Batch is tiny (8 rows): grid=() single invocation. For large batches, add a
    # grid over batch rows with dimension_semantics=("parallel",) to use both v7x cores.
    core = pl.pallas_call(
        single_year_rnn_kernel,
        out_shape=jax.ShapeDtypeStruct((B, KERNEL_OUT), jnp.float32),
        in_specs=[vmem, vmem, vmem],
        out_specs=vmem,
    )(x_lstm, X_s_flat, w_slab)

    # X_extra is a pure passthrough: concat outside the kernel.
    return jnp.concatenate([core[:, :WM_FC_OUT + S_FC_OUT], X_extra], axis=1)


# ------------------------------- pure-JAX reference ------------------------------
def reference_forward(X, params):
    B = X.shape[0]
    X_wm, X_s_flat, X_extra = _split_features(X)
    X_s = X_s_flat.reshape(B, NUM_SOIL_VARS, SOIL_DEPTHS)

    def dot(a, b):
        return jnp.dot(a, b, precision=jax.lax.Precision.HIGHEST)

    h = jnp.zeros((B, Z_DIM), jnp.float32)
    c = jnp.zeros((B, Z_DIM), jnp.float32)
    for t in range(TIME_INTERVALS):
        xt = X_wm[:, t, :]
        gates = dot(xt, params["w_ih"]) + dot(h, params["w_hh"]) + params["b_lstm"]
        i_g = jax.nn.sigmoid(gates[:, 0 * Z_DIM:1 * Z_DIM])
        f_g = jax.nn.sigmoid(gates[:, 1 * Z_DIM:2 * Z_DIM])
        g_g = jnp.tanh(gates[:, 2 * Z_DIM:3 * Z_DIM])
        o_g = jax.nn.sigmoid(gates[:, 3 * Z_DIM:4 * Z_DIM])
        c = f_g * c + i_g * g_g
        h = o_g * jnp.tanh(c)
    x_wm = jax.nn.relu(dot(h, params["w_wmfc"]) + params["b_wmfc"])

    def conv1d_relu(x, w, b):
        y = jax.lax.conv_general_dilated(
            x, w, window_strides=(1,), padding="VALID",
            dimension_numbers=("NCH", "OIH", "NCH"),
            precision=jax.lax.Precision.HIGHEST)
        return jax.nn.relu(y + b.reshape(1, -1, 1))

    hs = conv1d_relu(X_s, params["w_conv1"], params["b_conv1"])
    hs = conv1d_relu(hs, params["w_conv2"], params["b_conv2"])
    hs = conv1d_relu(hs, params["w_conv3"], params["b_conv3"])
    hs = hs[:, :, 0]                                              # squeeze(-1)
    x_s = jax.nn.relu(dot(hs, params["w_sfc"]) + params["b_sfc"])
    return jnp.concatenate([x_wm, x_s, X_extra], axis=1)


# ------------------------------------ main ---------------------------------------
if __name__ == "__main__":
    key = jax.random.PRNGKey(0)
    k_x, k_p = jax.random.split(key)
    X = jax.random.normal(k_x, (BATCH, N_FEAT), jnp.float32)
    params = init_params(k_p)

    out = single_year_rnn_forward(X, params)
    out = jax.block_until_ready(out)

    ref = jax.block_until_ready(reference_forward(X, params))
    assert out.shape == (BATCH, OUT_DIM), out.shape
    np.testing.assert_allclose(np.asarray(out), np.asarray(ref), atol=1e-2, rtol=1e-2)

    print("KERNEL_OK")
</pallas_src>

<mosaic_0001>
module attributes {stable_mosaic.version = 11 : i64} {
  func.func @single_year_rnn_kernel(%arg0: memref<64x8xf32, #tpu.memory_space<vmem>>, %arg1: memref<8x24xf32, #tpu.memory_space<vmem>>, %arg2: memref<520x128xf32, #tpu.memory_space<vmem>>, %arg3: memref<8x128xf32, #tpu.memory_space<vmem>>) attributes {dimension_semantics = [], scalar_prefetch = 0 : i64, scratch_operands = 0 : i64, tpu.core_type = #tpu.core_type<tc>} {
    %c0 = arith.constant 0 : index
    %c0_0 = arith.constant 0 : index
    %0 = vector.load %arg2[%c0, %c0_0] : memref<520x128xf32, #tpu.memory_space<vmem>>, vector<8x128xf32>
    %c8 = arith.constant 8 : index
    %c0_1 = arith.constant 0 : index
    %1 = vector.load %arg2[%c8, %c0_1] : memref<520x128xf32, #tpu.memory_space<vmem>>, vector<32x128xf32>
    %c40 = arith.constant 40 : index
    %c0_2 = arith.constant 0 : index
    %2 = vector.load %arg2[%c40, %c0_2] : memref<520x128xf32, #tpu.memory_space<vmem>>, vector<1x128xf32>
    %c48 = arith.constant 48 : index
    %c0_3 = arith.constant 0 : index
    %3 = vector.load %arg2[%c48, %c0_3] : memref<520x128xf32, #tpu.memory_space<vmem>>, vector<24x128xf32>
    %c72 = arith.constant 72 : index
    %c0_4 = arith.constant 0 : index
    %4 = vector.load %arg2[%c72, %c0_4] : memref<520x128xf32, #tpu.memory_space<vmem>>, vector<1x128xf32>
    %c80 = arith.constant 80 : index
    %c0_5 = arith.constant 0 : index
    %5 = vector.load %arg2[%c80, %c0_5] : memref<520x128xf32, #tpu.memory_space<vmem>>, vector<128x128xf32>
    %c208 = arith.constant 208 : index
    %c0_6 = arith.constant 0 : index
    %6 = vector.load %arg2[%c208, %c0_6] : memref<520x128xf32, #tpu.memory_space<vmem>>, vector<1x128xf32>
    %c216 = arith.constant 216 : index
    %c0_7 = arith.constant 0 : index
    %7 = vector.load %arg2[%c216, %c0_7] : memref<520x128xf32, #tpu.memory_space<vmem>>, vector<128x128xf32>
    %c344 = arith.constant 344 : index
    %c0_8 = arith.constant 0 : index
    %8 = vector.load %arg2[%c344, %c0_8] : memref<520x128xf32, #tpu.memory_space<vmem>>, vector<1x128xf32>
    %c352 = arith.constant 352 : index
    %c0_9 = arith.constant 0 : index
    %9 = vector.load %arg2[%c352, %c0_9] : memref<520x128xf32, #tpu.memory_space<vmem>>, vector<32x128xf32>
    %c384 = arith.constant 384 : index
    %c0_10 = arith.constant 0 : index
    %10 = vector.load %arg2[%c384, %c0_10] : memref<520x128xf32, #tpu.memory_space<vmem>>, vector<128x128xf32>
    %c512 = arith.constant 512 : index
    %c0_11 = arith.constant 0 : index
    %11 = vector.load %arg2[%c512, %c0_11] : memref<520x128xf32, #tpu.memory_space<vmem>>, vector<1x128xf32>
    %c0_12 = arith.constant 0 : index
    %c0_13 = arith.constant 0 : index
    %12 = vector.load %arg0[%c0_12, %c0_13] : memref<64x8xf32, #tpu.memory_space<vmem>>, vector<64x8xf32>
    %cst = arith.constant dense<0.000000e+00> : vector<64x128xf32>
    %13 = tpu.matmul %12, %0, %cst {dimension_numbers = #tpu.dot_dimension_numbers<[1], [0], [0], [1], [0, 0, 1, 1], [], []>} : vector<64x8xf32>, vector<8x128xf32>, vector<64x128xf32> -> vector<64x128xf32>
    %14 = vector.broadcast %2 : vector<1x128xf32> to vector<64x128xf32>
    %15 = arith.addf %13, %14 : vector<64x128xf32>
    %cst_14 = arith.constant 0.000000e+00 : f32
    %16 = vector.broadcast %cst_14 : f32 to vector<8x32xf32>
    %cst_15 = arith.constant 0.000000e+00 : f32
    %17 = vector.broadcast %cst_15 : f32 to vector<8x32xf32>
    %18 = vector.extract_strided_slice %15 {offsets = [0, 0], sizes = [8, 128], strides = [1, 1]} : vector<64x128xf32> to vector<8x128xf32>
    %cst_16 = arith.constant dense<0.000000e+00> : vector<8x128xf32>
    %19 = tpu.matmul %16, %1, %cst_16 {dimension_numbers = #tpu.dot_dimension_numbers<[1], [0], [0], [1], [0, 0, 1, 1], [], []>} : vector<8x32xf32>, vector<32x128xf32>, vector<8x128xf32> -> vector<8x128xf32>
    %20 = arith.addf %18, %19 : vector<8x128xf32>
    %21 = vector.extract_strided_slice %20 {offsets = [0, 0], sizes = [8, 96], strides = [1, 1]} : vector<8x128xf32> to vector<8x96xf32>
    %22 = arith.negf %21 : vector<8x96xf32>
    %23 = math.exp %22 : vector<8x96xf32>
    %cst_17 = arith.constant 1.000000e+00 : f32
    %24 = vector.broadcast %cst_17 : f32 to vector<8x96xf32>
    %25 = arith.addf %24, %23 : vector<8x96xf32>
    %26 = arith.divf %24, %25 : vector<8x96xf32>
    %27 = vector.extract_strided_slice %20 {offsets = [0, 96], sizes = [8, 32], strides = [1, 1]} : vector<8x128xf32> to vector<8x32xf32>
    %28 = math.tanh %27 : vector<8x32xf32>
    %29 = vector.extract_strided_slice %26 {offsets = [0, 0], sizes = [8, 32], strides = [1, 1]} : vector<8x96xf32> to vector<8x32xf32>
    %30 = vector.extract_strided_slice %26 {offsets = [0, 32], sizes = [8, 32], strides = [1, 1]} : vector<8x96xf32> to vector<8x32xf32>
    %31 = vector.extract_strided_slice %26 {offsets = [0, 64], sizes = [8, 32], strides = [1, 1]} : vector<8x96xf32> to vector<8x32xf32>
    %32 = arith.mulf %30, %17 : vector<8x32xf32>
    %33 = arith.mulf %29, %28 : vector<8x32xf32>
    %34 = arith.addf %32, %33 : vector<8x32xf32>
    %35 = math.tanh %34 : vector<8x32xf32>
    %36 = arith.mulf %31, %35 : vector<8x32xf32>
    %37 = vector.extract_strided_slice %15 {offsets = [8, 0], sizes = [8, 128], strides = [1, 1]} : vector<64x128xf32> to vector<8x128xf32>
    %cst_18 = arith.constant dense<0.000000e+00> : vector<8x128xf32>
    %38 = tpu.matmul %36, %1, %cst_18 {dimension_numbers = #tpu.dot_dimension_numbers<[1], [0], [0], [1], [0, 0, 1, 1], [], []>} : vector<8x32xf32>, vector<32x128xf32>, vector<8x128xf32> -> vector<8x128xf32>
    %39 = arith.addf %37, %38 : vector<8x128xf32>
    %40 = vector.extract_strided_slice %39 {offsets = [0, 0], sizes = [8, 96], strides = [1, 1]} : vector<8x128xf32> to vector<8x96xf32>
    %41 = arith.negf %40 : vector<8x96xf32>
    %42 = math.exp %41 : vector<8x96xf32>
    %cst_19 = arith.constant 1.000000e+00 : f32
    %43 = vector.broadcast %cst_19 : f32 to vector<8x96xf32>
    %44 = arith.addf %43, %42 : vector<8x96xf32>
    %45 = arith.divf %43, %44 : vector<8x96xf32>
    %46 = vector.extract_strided_slice %39 {offsets = [0, 96], sizes = [8, 32], strides = [1, 1]} : vector<8x128xf32> to vector<8x32xf32>
    %47 = math.tanh %46 : vector<8x32xf32>
    %48 = vector.extract_strided_slice %45 {offsets = [0, 0], sizes = [8, 32], strides = [1, 1]} : vector<8x96xf32> to vector<8x32xf32>
    %49 = vector.extract_strided_slice %45 {offsets = [0, 32], sizes = [8, 32], strides = [1, 1]} : vector<8x96xf32> to vector<8x32xf32>
    %50 = vector.extract_strided_slice %45 {offsets = [0, 64], sizes = [8, 32], strides = [1, 1]} : vector<8x96xf32> to vector<8x32xf32>
    %51 = arith.mulf %49, %34 : vector<8x32xf32>
    %52 = arith.mulf %48, %47 : vector<8x32xf32>
    %53 = arith.addf %51, %52 : vector<8x32xf32>
    %54 = math.tanh %53 : vector<8x32xf32>
    %55 = arith.mulf %50, %54 : vector<8x32xf32>
    %56 = vector.extract_strided_slice %15 {offsets = [16, 0], sizes = [8, 128], strides = [1, 1]} : vector<64x128xf32> to vector<8x128xf32>
    %cst_20 = arith.constant dense<0.000000e+00> : vector<8x128xf32>
    %57 = tpu.matmul %55, %1, %cst_20 {dimension_numbers = #tpu.dot_dimension_numbers<[1], [0], [0], [1], [0, 0, 1, 1], [], []>} : vector<8x32xf32>, vector<32x128xf32>, vector<8x128xf32> -> vector<8x128xf32>
    %58 = arith.addf %56, %57 : vector<8x128xf32>
    %59 = vector.extract_strided_slice %58 {offsets = [0, 0], sizes = [8, 96], strides = [1, 1]} : vector<8x128xf32> to vector<8x96xf32>
    %60 = arith.negf %59 : vector<8x96xf32>
    %61 = math.exp %60 : vector<8x96xf32>
    %cst_21 = arith.constant 1.000000e+00 : f32
    %62 = vector.broadcast %cst_21 : f32 to vector<8x96xf32>
    %63 = arith.addf %62, %61 : vector<8x96xf32>
    %64 = arith.divf %62, %63 : vector<8x96xf32>
    %65 = vector.extract_strided_slice %58 {offsets = [0, 96], sizes = [8, 32], strides = [1, 1]} : vector<8x128xf32> to vector<8x32xf32>
    %66 = math.tanh %65 : vector<8x32xf32>
    %67 = vector.extract_strided_slice %64 {offsets = [0, 0], sizes = [8, 32], strides = [1, 1]} : vector<8x96xf32> to vector<8x32xf32>
    %68 = vector.extract_strided_slice %64 {offsets = [0, 32], sizes = [8, 32], strides = [1, 1]} : vector<8x96xf32> to vector<8x32xf32>
    %69 = vector.extract_strided_slice %64 {offsets = [0, 64], sizes = [8, 32], strides = [1, 1]} : vector<8x96xf32> to vector<8x32xf32>
    %70 = arith.mulf %68, %53 : vector<8x32xf32>
    %71 = arith.mulf %67, %66 : vector<8x32xf32>
    %72 = arith.addf %70, %71 : vector<8x32xf32>
    %73 = math.tanh %72 : vector<8x32xf32>
    %74 = arith.mulf %69, %73 : vector<8x32xf32>
    %75 = vector.extract_strided_slice %15 {offsets = [24, 0], sizes = [8, 128], strides = [1, 1]} : vector<64x128xf32> to vector<8x128xf32>
    %cst_22 = arith.constant dense<0.000000e+00> : vector<8x128xf32>
    %76 = tpu.matmul %74, %1, %cst_22 {dimension_numbers = #tpu.dot_dimension_numbers<[1], [0], [0], [1], [0, 0, 1, 1], [], []>} : vector<8x32xf32>, vector<32x128xf32>, vector<8x128xf32> -> vector<8x128xf32>
    %77 = arith.addf %75, %76 : vector<8x128xf32>
    %78 = vector.extract_strided_slice %77 {offsets = [0, 0], sizes = [8, 96], strides = [1, 1]} : vector<8x128xf32> to vector<8x96xf32>
    %79 = arith.negf %78 : vector<8x96xf32>
    %80 = math.exp %79 : vector<8x96xf32>
    %cst_23 = arith.constant 1.000000e+00 : f32
    %81 = vector.broadcast %cst_23 : f32 to vector<8x96xf32>
    %82 = arith.addf %81, %80 : vector<8x96xf32>
    %83 = arith.divf %81, %82 : vector<8x96xf32>
    %84 = vector.extract_strided_slice %77 {offsets = [0, 96], sizes = [8, 32], strides = [1, 1]} : vector<8x128xf32> to vector<8x32xf32>
    %85 = math.tanh %84 : vector<8x32xf32>
    %86 = vector.extract_strided_slice %83 {offsets = [0, 0], sizes = [8, 32], strides = [1, 1]} : vector<8x96xf32> to vector<8x32xf32>
    %87 = vector.extract_strided_slice %83 {offsets = [0, 32], sizes = [8, 32], strides = [1, 1]} : vector<8x96xf32> to vector<8x32xf32>
    %88 = vector.extract_strided_slice %83 {offsets = [0, 64], sizes = [8, 32], strides = [1, 1]} : vector<8x96xf32> to vector<8x32xf32>
    %89 = arith.mulf %87, %72 : vector<8x32xf32>
    %90 = arith.mulf %86, %85 : vector<8x32xf32>
    %91 = arith.addf %89, %90 : vector<8x32xf32>
    %92 = math.tanh %91 : vector<8x32xf32>
    %93 = arith.mulf %88, %92 : vector<8x32xf32>
    %94 = vector.extract_strided_slice %15 {offsets = [32, 0], sizes = [8, 128], strides = [1, 1]} : vector<64x128xf32> to vector<8x128xf32>
    %cst_24 = arith.constant dense<0.000000e+00> : vector<8x128xf32>
    %95 = tpu.matmul %93, %1, %cst_24 {dimension_numbers = #tpu.dot_dimension_numbers<[1], [0], [0], [1], [0, 0, 1, 1], [], []>} : vector<8x32xf32>, vector<32x128xf32>, vector<8x128xf32> -> vector<8x128xf32>
    %96 = arith.addf %94, %95 : vector<8x128xf32>
    %97 = vector.extract_strided_slice %96 {offsets = [0, 0], sizes = [8, 96], strides = [1, 1]} : vector<8x128xf32> to vector<8x96xf32>
    %98 = arith.negf %97 : vector<8x96xf32>
    %99 = math.exp %98 : vector<8x96xf32>
    %cst_25 = arith.constant 1.000000e+00 : f32
    %100 = vector.broadcast %cst_25 : f32 to vector<8x96xf32>
    %101 = arith.addf %100, %99 : vector<8x96xf32>
    %102 = arith.divf %100, %101 : vector<8x96xf32>
    %103 = vector.extract_strided_slice %96 {offsets = [0, 96], sizes = [8, 32], strides = [1, 1]} : vector<8x128xf32> to vector<8x32xf32>
    %104 = math.tanh %103 : vector<8x32xf32>
    %105 = vector.extract_strided_slice %102 {offsets = [0, 0], sizes = [8, 32], strides = [1, 1]} : vector<8x96xf32> to vector<8x32xf32>
    %106 = vector.extract_strided_slice %102 {offsets = [0, 32], sizes = [8, 32], strides = [1, 1]} : vector<8x96xf32> to vector<8x32xf32>
    %107 = vector.extract_strided_slice %102 {offsets = [0, 64], sizes = [8, 32], strides = [1, 1]} : vector<8x96xf32> to vector<8x32xf32>
    %108 = arith.mulf %106, %91 : vector<8x32xf32>
    %109 = arith.mulf %105, %104 : vector<8x32xf32>
    %110 = arith.addf %108, %109 : vector<8x32xf32>
    %111 = math.tanh %110 : vector<8x32xf32>
    %112 = arith.mulf %107, %111 : vector<8x32xf32>
    %113 = vector.extract_strided_slice %15 {offsets = [40, 0], sizes = [8, 128], strides = [1, 1]} : vector<64x128xf32> to vector<8x128xf32>
    %cst_26 = arith.constant dense<0.000000e+00> : vector<8x128xf32>
    %114 = tpu.matmul %112, %1, %cst_26 {dimension_numbers = #tpu.dot_dimension_numbers<[1], [0], [0], [1], [0, 0, 1, 1], [], []>} : vector<8x32xf32>, vector<32x128xf32>, vector<8x128xf32> -> vector<8x128xf32>
    %115 = arith.addf %113, %114 : vector<8x128xf32>
    %116 = vector.extract_strided_slice %115 {offsets = [0, 0], sizes = [8, 96], strides = [1, 1]} : vector<8x128xf32> to vector<8x96xf32>
    %117 = arith.negf %116 : vector<8x96xf32>
    %118 = math.exp %117 : vector<8x96xf32>
    %cst_27 = arith.constant 1.000000e+00 : f32
    %119 = vector.broadcast %cst_27 : f32 to vector<8x96xf32>
    %120 = arith.addf %119, %118 : vector<8x96xf32>
    %121 = arith.divf %119, %120 : vector<8x96xf32>
    %122 = vector.extract_strided_slice %115 {offsets = [0, 96], sizes = [8, 32], strides = [1, 1]} : vector<8x128xf32> to vector<8x32xf32>
    %123 = math.tanh %122 : vector<8x32xf32>
    %124 = vector.extract_strided_slice %121 {offsets = [0, 0], sizes = [8, 32], strides = [1, 1]} : vector<8x96xf32> to vector<8x32xf32>
    %125 = vector.extract_strided_slice %121 {offsets = [0, 32], sizes = [8, 32], strides = [1, 1]} : vector<8x96xf32> to vector<8x32xf32>
    %126 = vector.extract_strided_slice %121 {offsets = [0, 64], sizes = [8, 32], strides = [1, 1]} : vector<8x96xf32> to vector<8x32xf32>
    %127 = arith.mulf %125, %110 : vector<8x32xf32>
    %128 = arith.mulf %124, %123 : vector<8x32xf32>
    %129 = arith.addf %127, %128 : vector<8x32xf32>
    %130 = math.tanh %129 : vector<8x32xf32>
    %131 = arith.mulf %126, %130 : vector<8x32xf32>
    %132 = vector.extract_strided_slice %15 {offsets = [48, 0], sizes = [8, 128], strides = [1, 1]} : vector<64x128xf32> to vector<8x128xf32>
    %cst_28 = arith.constant dense<0.000000e+00> : vector<8x128xf32>
    %133 = tpu.matmul %131, %1, %cst_28 {dimension_numbers = #tpu.dot_dimension_numbers<[1], [0], [0], [1], [0, 0, 1, 1], [], []>} : vector<8x32xf32>, vector<32x128xf32>, vector<8x128xf32> -> vector<8x128xf32>
    %134 = arith.addf %132, %133 : vector<8x128xf32>
    %135 = vector.extract_strided_slice %134 {offsets = [0, 0], sizes = [8, 96], strides = [1, 1]} : vector<8x128xf32> to vector<8x96xf32>
    %136 = arith.negf %135 : vector<8x96xf32>
    %137 = math.exp %136 : vector<8x96xf32>
    %cst_29 = arith.constant 1.000000e+00 : f32
    %138 = vector.broadcast %cst_29 : f32 to vector<8x96xf32>
    %139 = arith.addf %138, %137 : vector<8x96xf32>
    %140 = arith.divf %138, %139 : vector<8x96xf32>
    %141 = vector.extract_strided_slice %134 {offsets = [0, 96], sizes = [8, 32], strides = [1, 1]} : vector<8x128xf32> to vector<8x32xf32>
    %142 = math.tanh %141 : vector<8x32xf32>
    %143 = vector.extract_strided_slice %140 {offsets = [0, 0], sizes = [8, 32], strides = [1, 1]} : vector<8x96xf32> to vector<8x32xf32>
    %144 = vector.extract_strided_slice %140 {offsets = [0, 32], sizes = [8, 32], strides = [1, 1]} : vector<8x96xf32> to vector<8x32xf32>
    %145 = vector.extract_strided_slice %140 {offsets = [0, 64], sizes = [8, 32], strides = [1, 1]} : vector<8x96xf32> to vector<8x32xf32>
    %146 = arith.mulf %144, %129 : vector<8x32xf32>
    %147 = arith.mulf %143, %142 : vector<8x32xf32>
    %148 = arith.addf %146, %147 : vector<8x32xf32>
    %149 = math.tanh %148 : vector<8x32xf32>
    %150 = arith.mulf %145, %149 : vector<8x32xf32>
    %151 = vector.extract_strided_slice %15 {offsets = [56, 0], sizes = [8, 128], strides = [1, 1]} : vector<64x128xf32> to vector<8x128xf32>
    %cst_30 = arith.constant dense<0.000000e+00> : vector<8x128xf32>
    %152 = tpu.matmul %150, %1, %cst_30 {dimension_numbers = #tpu.dot_dimension_numbers<[1], [0], [0], [1], [0, 0, 1, 1], [], []>} : vector<8x32xf32>, vector<32x128xf32>, vector<8x128xf32> -> vector<8x128xf32>
    %153 = arith.addf %151, %152 : vector<8x128xf32>
    %154 = vector.extract_strided_slice %153 {offsets = [0, 0], sizes = [8, 96], strides = [1, 1]} : vector<8x128xf32> to vector<8x96xf32>
    %155 = arith.negf %154 : vector<8x96xf32>
    %156 = math.exp %155 : vector<8x96xf32>
    %cst_31 = arith.constant 1.000000e+00 : f32
    %157 = vector.broadcast %cst_31 : f32 to vector<8x96xf32>
    %158 = arith.addf %157, %156 : vector<8x96xf32>
    %159 = arith.divf %157, %158 : vector<8x96xf32>
    %160 = vector.extract_strided_slice %153 {offsets = [0, 96], sizes = [8, 32], strides = [1, 1]} : vector<8x128xf32> to vector<8x32xf32>
    %161 = math.tanh %160 : vector<8x32xf32>
    %162 = vector.extract_strided_slice %159 {offsets = [0, 0], sizes = [8, 32], strides = [1, 1]} : vector<8x96xf32> to vector<8x32xf32>
    %163 = vector.extract_strided_slice %159 {offsets = [0, 32], sizes = [8, 32], strides = [1, 1]} : vector<8x96xf32> to vector<8x32xf32>
    %164 = vector.extract_strided_slice %159 {offsets = [0, 64], sizes = [8, 32], strides = [1, 1]} : vector<8x96xf32> to vector<8x32xf32>
    %165 = arith.mulf %163, %148 : vector<8x32xf32>
    %166 = arith.mulf %162, %161 : vector<8x32xf32>
    %167 = arith.addf %165, %166 : vector<8x32xf32>
    %168 = math.tanh %167 : vector<8x32xf32>
    %169 = arith.mulf %164, %168 : vector<8x32xf32>
    %c0_32 = arith.constant 0 : index
    %c0_33 = arith.constant 0 : index
    %170 = vector.load %arg1[%c0_32, %c0_33] : memref<8x24xf32, #tpu.memory_space<vmem>>, vector<8x24xf32>
    %cst_34 = arith.constant dense<0.000000e+00> : vector<8x128xf32>
    %171 = tpu.matmul %170, %3, %cst_34 {dimension_numbers = #tpu.dot_dimension_numbers<[1], [0], [0], [1], [0, 0, 1, 1], [], []>} : vector<8x24xf32>, vector<24x128xf32>, vector<8x128xf32> -> vector<8x128xf32>
    %172 = vector.broadcast %4 : vector<1x128xf32> to vector<8x128xf32>
    %173 = arith.addf %171, %172 : vector<8x128xf32>
    %cst_35 = arith.constant 0.000000e+00 : f32
    %174 = vector.broadcast %cst_35 : f32 to vector<8x128xf32>
    %175 = arith.maximumf %173, %174 : vector<8x128xf32>
    %cst_36 = arith.constant dense<0.000000e+00> : vector<8x128xf32>
    %176 = tpu.matmul %175, %5, %cst_36 {dimension_numbers = #tpu.dot_dimension_numbers<[1], [0], [0], [1], [0, 0, 1, 1], [], []>} : vector<8x128xf32>, vector<128x128xf32>, vector<8x128xf32> -> vector<8x128xf32>
    %177 = vector.broadcast %6 : vector<1x128xf32> to vector<8x128xf32>
    %178 = arith.addf %176, %177 : vector<8x128xf32>
    %cst_37 = arith.constant 0.000000e+00 : f32
    %179 = vector.broadcast %cst_37 : f32 to vector<8x128xf32>
    %180 = arith.maximumf %178, %179 : vector<8x128xf32>
    %cst_38 = arith.constant dense<0.000000e+00> : vector<8x128xf32>
    %181 = tpu.matmul %180, %7, %cst_38 {dimension_numbers = #tpu.dot_dimension_numbers<[1], [0], [0], [1], [0, 0, 1, 1], [], []>} : vector<8x128xf32>, vector<128x128xf32>, vector<8x128xf32> -> vector<8x128xf32>
    %182 = vector.broadcast %8 : vector<1x128xf32> to vector<8x128xf32>
    %183 = arith.addf %181, %182 : vector<8x128xf32>
    %cst_39 = arith.constant 0.000000e+00 : f32
    %184 = vector.broadcast %cst_39 : f32 to vector<8x128xf32>
    %185 = arith.maximumf %183, %184 : vector<8x128xf32>
    %cst_40 = arith.constant dense<0.000000e+00> : vector<8x128xf32>
    %186 = tpu.matmul %169, %9, %cst_40 {dimension_numbers = #tpu.dot_dimension_numbers<[1], [0], [0], [1], [0, 0, 1, 1], [], []>} : vector<8x32xf32>, vector<32x128xf32>, vector<8x128xf32> -> vector<8x128xf32>
    %cst_41 = arith.constant dense<0.000000e+00> : vector<8x128xf32>
    %187 = tpu.matmul %185, %10, %cst_41 {dimension_numbers = #tpu.dot_dimension_numbers<[1], [0], [0], [1], [0, 0, 1, 1], [], []>} : vector<8x128xf32>, vector<128x128xf32>, vector<8x128xf32> -> vector<8x128xf32>
    %188 = arith.addf %186, %187 : vector<8x128xf32>
    %189 = vector.broadcast %11 : vector<1x128xf32> to vector<8x128xf32>
    %190 = arith.addf %188, %189 : vector<8x128xf32>
    %cst_42 = arith.constant 0.000000e+00 : f32
    %191 = vector.broadcast %cst_42 : f32 to vector<8x128xf32>
    %192 = arith.maximumf %190, %191 : vector<8x128xf32>
    %c0_43 = arith.constant 0 : index
    %c0_44 = arith.constant 0 : index
    %193 = vector.load %arg3[%c0_43, %c0_44] : memref<8x128xf32, #tpu.memory_space<vmem>>, vector<8x128xf32>
    tpu.vector_store %arg3[%c0_43, %c0_44], %192 {strides = array<i32>} : memref<8x128xf32, #tpu.memory_space<vmem>>, vector<8x128xf32>,
    return
  }
}

</mosaic_0001>

<bundles_post_ra>
// kernel: tpu_custom_call.1
= control target key start
LH: loop header
LB: loop body
LE: loop exit
PB: predicated region body
PF: predicated region fallthrough
CT: control target
= control target key end

     0   :  { %8 = vsyncpa [#allocation3], 0  ;;  %s2204_s0 = inlined_call_operand.vmem [shape: f32[64,8], index: 0, kind: input, shape index: {}]   ;;  %s2205_s1 = inlined_call_operand.vmem [shape: f32[8,24], index: 1, kind: input, shape index: {}]   ;;  %s2206_s2 = inlined_call_operand.hbm [shape: f32[520,128], index: 2, kind: input, shape index: {}]   ;;  %s2207_s3 = inlined_call_operand.hbm [shape: f32[8,128], index: 3, kind: output, shape index: {}]  }
   0x1   :  { %9 = vsyncpa [#allocation4], 0  ;;  %s1914_s12 = smov [#allocation2]  }
   0x2   :  { %s19_s13 = sshll.u32 %s1914_s12, 4  ;;  %s20_s13 = int_to_ptr.vmem [resolvable:$true] %s19_s13 }
   0x3   :  { %s1878_s14 = scalar_lea.vmem %s20_s13, 8320  ;;  %p1883_p1 = scmp.lt.s32.totalorder %s20_s13, %s20_s13 }
   0x4   :  { %p1879_p0 = scmp.ne.s32.totalorder %s20_s13, %s1878_s14  ;;  %p1884_p2 = scmp.lt.s32.totalorder %s1878_s14, %s1878_s14 }
   0x6   :  { %p1885_p3 = por %p1884_p2, %p1883_p1 }
   0x8   :  { %p1886_p4 = pnand %p1885_p3, %p1879_p0 }
   0xa   :  { %1889 = shalt.err (!%p1886_p4)
}
   0xb   :  { %s1915_s15 = smov 128   ;;  %s1916_s16 = smov 8  }
   0xc   :  { %25 = dma.hbm_to_vmem [thread:$0]  %s2206_s2, 8320, %s20_s13, [#allocation3], %s1915_s15, %s1915_s15, %s1916_s16  }
   0xd   :  { %1910 = dma.done.wait [#allocation3], 8320  }
   0xe   :  { %1911 = vsyncadd [#allocation3], 4294958976  ;;  %v1917_v0 = vmov 0.0   ;;  %vm1918_vm0 = vmmov 0   ;;  %vm106_vm1 = vcmask 64512   ;;  %v29_v1 = vld [vmem:[#allocation2] sm:$0xff] }
   0xf   :  { %1607 = vmatprep.subr.mxu0 %v1917_v0  ;;  %1615 = vmatprep.mubr.msk.f32.mxu0 %vm1918_vm0, %v1917_v0  ;;  %v94_v2 = vld [vmem:[%s2204_s0] sm:$0xff]  ;;  %v95_v3 = vld [vmem:[%s2204_s0 + $0x8] sm:$0xff]  ;;  %v96_v5 = vld [vmem:[%s2204_s0 + $0x10] sm:$0xff]  ;;  %s1920_s7 = smov 64   ;;  %vm236_vm2 = vcmask 261120   ;;  %vm1040_vm3 = vcmask 195584  }
  0x10   :  { %1571 = vmatprep.subr.mxu1 %v29_v1  ;;  %1573 = vmatprep.mubr.msk.f32.mxu1 %vm106_vm1, %v94_v2  ;;  %v1955_v4 = vld [vmem:[#allocation2 + $0x20] sm:$0xff]  ;;  %v1963_v6 = vld [vmem:[#allocation2 + $0x18] sm:$0xff]  ;;  %v1974_v9 = vld [vmem:[#allocation2 + $0x10] sm:$0xff] }
  0x11   :  { %1572 = vmatpush3.msra.mxu1 %v29_v1  ;;  %1608 = vmatpush3.msra.mxu0 %v1955_v4  ;;  %v97_v7 = vld [vmem:[%s2204_s0 + $0x18] sm:$0xff]  ;;  %v98_v8 = vld [vmem:[%s2204_s0 + $0x20] sm:$0xff]  ;;  %v1981_v10 = vld [vmem:[#allocation2 + $0x8] sm:$0xff] }
  0x12   :  { %1574 = vmatmul.mubr.msk.f32.vlgmr.msra.gmra.mxu1 %vm106_vm1, %v95_v3  ;;  %1585 = vmatprep.subr.mxu1 %v1917_v0  ;;  %v99_v11 = vld [vmem:[%s2204_s0 + $0x28] sm:$0xff]  ;;  %v100_v12 = vld [vmem:[%s2204_s0 + $0x30] sm:$0xff]  ;;  %v101_v13 = vld [vmem:[%s2204_s0 + $0x38] sm:$0xff]  ;;  %s1919_s0 = smov 32  }
  0x13   :  { %1586 = vmatpush3.msra.mxu1 %v1955_v4  ;;  %1576 = vmatprep.mubr.msk.f32.mxu1 %vm106_vm1, %v96_v5  ;;  %v1432_v14 = vld [vmem:[#allocation2 + $0x28] ss:$0 sm:$0xff] }
  0x14   :  { %1587 = vmatprep.subr.mxu1 %v1917_v0  ;;  %1609 = vmatprep.subr.mxu0 %v1917_v0 }
  0x15   :  { %1588 = vmatpush3.msra.mxu1 %v1963_v6  ;;  %1610 = vmatpush3.msra.mxu0 %v1963_v6 }
  0x16   :  { %1577 = vmatmul.mubr.msk.f32.gmra.mxu1 %vm106_vm1, %v97_v7  ;;  %1589 = vmatprep.subr.mxu1 %v1917_v0 }
  0x17   :  { %1579 = vmatprep.mubr.msk.f32.mxu1 %vm106_vm1, %v98_v8  ;;  %1590 = vmatpush3.msra.mxu1 %v1974_v9 }
  0x18   :  { %1591 = vmatprep.subr.mxu1 %v1917_v0  ;;  %1611 = vmatprep.subr.mxu0 %v1917_v0 }
  0x19   :  { %1592 = vmatpush3.msra.mxu1 %v1981_v10  ;;  %1612 = vmatpush3.msra.mxu0 %v1974_v9 }
  0x1a   :  { %1580 = vmatmul.mubr.msk.f32.gmra.mxu1 %vm106_vm1, %v99_v11  ;;  %1596 = vmatprep.subr.mxu1 %v1917_v0 }
  0x1b   :  { %1582 = vmatprep.mubr.msk.f32.mxu1 %vm106_vm1, %v100_v12  ;;  %1613 = vmatprep.subr.mxu0 %v1917_v0 }
  0x1c   :  { %1614 = vmatpush3.msra.mxu0 %v1981_v10 }
  0x1d   :  { %1629 = vmatprep.subr.mxu0 %v1917_v0 }
  0x1e   :  { %1583 = vmatmul.mubr.msk.f32.gmra.mxu1 %vm106_vm1, %v101_v13 }
  0x1f   :  { %1593 = vmatprep.mubr.msk.f32.mxu1 %vm1918_vm0, %v1917_v0 }
  0x22   :  { %1594 = vmatmul.mubr.f32.vlgmr.msra.gmra.mxu1 %v1917_v0 }
  0x23   :  { %1597 = vmatpush3.msra.mxu1 %v1955_v4  ;;  %1604 = vmatprep.mubr.msk.f32.mxu1 %vm1918_vm0, %v1917_v0 }
  0x24   :  { %1598 = vmatprep.subr.mxu1 %v1917_v0 }
  0x25   :  { %1599 = vmatpush3.msra.mxu1 %v1963_v6 }
  0x26   :  { %1600 = vmatprep.subr.mxu1 %v1917_v0 }
  0x27   :  { %1601 = vmatpush3.msra.mxu1 %v1974_v9 }
  0x28   :  { %1602 = vmatprep.subr.mxu1 %v1917_v0 }
  0x29   :  { %1603 = vmatpush3.msra.mxu1 %v1981_v10 }
  0x2a   :  { %1618 = vmatprep.subr.mxu1 %v1917_v0 }
  0xd2   :  { %v1575_v15 = vpop.f32.mrf.mxu1 }
  0xd3   :  { %v203_v16 = vadd.f32 %v1575_v15, %v1432_v14 }
  0xd4   :  { %v197_v17 = vpop.f32.mrf.mxu1 }
  0xd5   :  { %v198_v29 = vadd.f32 %v1432_v14, %v197_v17 }
  0xd6   :  { %v1578_v18 = vpop.f32.mrf.mxu1 }
  0xd7   :  { %v2018_v19 = vadd.f32 %v1578_v18, %v1432_v14 }
  0xd8   :  { %v207_v20 = vpop.f32.mrf.mxu1 }
  0xd9   :  { %v2020_v21 = vadd.f32 %v1432_v14, %v207_v20 }
  0xda   :  { %v1581_v22 = vpop.f32.mrf.mxu1 }
  0xdb   :  { %v2022_v23 = vadd.f32 %v1581_v22, %v1432_v14 }
  0xdc   :  { %v217_v24 = vpop.f32.mrf.mxu1 }
  0xdd   :  { %v2024_v25 = vadd.f32 %v1432_v14, %v217_v24 }
  0xde   :  { %v1584_v26 = vpop.f32.mrf.mxu1 }
  0xdf   :  { %v2026_v27 = vadd.f32 %v1584_v26, %v1432_v14 }
  0xe0   :  { %v227_v28 = vpop.f32.mrf.mxu1 }
  0xe1   :  { %v2028_v30 = vadd.f32 %v1432_v14, %v227_v28 }
  0xe2   :  { %v306_v31 = vpop.f32.mrf.mxu1 }
  0xe3   :  { %v310_v32 = vadd.f32 %v306_v31, %v198_v29 }
  0xe4   :  { %v1595_v33 = vpop.f32.mrf.mxu1 }
  0xe5   :  { %1806 = vtanh.f32 %v310_v32  ;;  %v1441_v35 = vmul.f32 -1.442695, %v310_v32 }
  0xe7   :  { %1808 = vpow2.f32 %v1441_v35 }
  0xf2   :  { %v1807_v34 = vpop.eup %1806 }
  0xf3   :  { %320 = vrot.lane.b32.xlu0 %v1807_v34, %s1919_s0 }
  0xf4   :  { %v1809_v36 = vpop.eup %1808 }
  0xf5   :  { %v314_v37 = vadd.f32 1.0, %v1809_v36 }
  0xf7   :  { %1810 = vrcp.f32 %v314_v37 }
 0x104   :  { %v1811_v38 = vpop.eup %1810 }
 0x105   :  { %v318_v41 = vmul.f32 0.0, %v1811_v38 }
 0x165   :  { %v321_v39 = vpop.permute.xlu0 %320 }
 0x166   :  { %v323_v40 = vmul.f32 %v1811_v38, %v321_v39 }
 0x168   :  { %325 = vrot.lane.b32.xlu0 %v323_v40, %s1919_s0 }
 0x1da   :  { %v326_v42 = vpop.permute.xlu0 %325 }
 0x1db   :  { %v328_v43 = vadd.f32 %v326_v42, %v318_v41 }
 0x1dd   :  { %1812 = vtanh.f32 %v328_v43 }
 0x1ea   :  { %v1813_v44 = vpop.eup %1812 }
 0x1eb   :  { %331 = vrot.lane.b32.xlu1 %v1813_v44, %s1919_s0 }
 0x25d   :  { %v332_v45 = vpop.permute.xlu1 %331 }
 0x25e   :  { %v334_v46 = vmul.f32 %v1811_v38, %v332_v45 }
 0x260   :  { %336 = vrot.lane.b32.xlu1 %v334_v46, %s1920_s7 }
 0x2d2   :  { %v337_v47 = vpop.permute.xlu1 %336 }
 0x2d3   :  { %1605 = vmatmul.mubr.msk.f32.vlgmr.msra.gmra.mxu1 %vm236_vm2, %v337_v47 }
 0x2d4   :  { %1619 = vmatpush3.msra.mxu1 %v1955_v4  ;;  %1626 = vmatprep.mubr.msk.f32.mxu1 %vm1918_vm0, %v1917_v0 }
 0x2d5   :  { %1620 = vmatprep.subr.mxu1 %v1917_v0 }
 0x2d6   :  { %1621 = vmatpush3.msra.mxu1 %v1963_v6 }
 0x2d7   :  { %1622 = vmatprep.subr.mxu1 %v1917_v0 }
 0x2d8   :  { %1623 = vmatpush3.msra.mxu1 %v1974_v9 }
 0x2d9   :  { %1624 = vmatprep.subr.mxu1 %v1917_v0 }
 0x2da   :  { %1625 = vmatpush3.msra.mxu1 %v1981_v10 }
 0x2db   :  { %1640 = vmatprep.subr.mxu1 %v1917_v0 }
 0x393   :  { %v406_v48 = vpop.f32.mrf.mxu1 }
 0x394   :  { %v410_v49 = vadd.f32 %v406_v48, %v203_v16 }
 0x395   :  { %v1606_v50 = vpop.f32.mrf.mxu1 }
 0x396   :  { %1814 = vtanh.f32 %v410_v49  ;;  %v1443_v52 = vmul.f32 -1.442695, %v410_v49 }
 0x398   :  { %1816 = vpow2.f32 %v1443_v52 }
 0x3a3   :  { %v1815_v51 = vpop.eup %1814 }
 0x3a4   :  { %420 = vrot.lane.b32.xlu0 %v1815_v51, %s1919_s0 }
 0x3a5   :  { %v1817_v53 = vpop.eup %1816 }
 0x3a6   :  { %v414_v54 = vadd.f32 1.0, %v1817_v53 }
 0x3a8   :  { %1818 = vrcp.f32 %v414_v54 }
 0x3b5   :  { %v1819_v55 = vpop.eup %1818 }
 0x3b6   :  { %v418_v58 = vmul.f32 %v1819_v55, %v328_v43 }
 0x416   :  { %v421_v56 = vpop.permute.xlu0 %420 }
 0x417   :  { %v423_v57 = vmul.f32 %v1819_v55, %v421_v56 }
 0x419   :  { %425 = vrot.lane.b32.xlu1 %v423_v57, %s1919_s0 }
 0x48b   :  { %v426_v59 = vpop.permute.xlu1 %425 }
 0x48c   :  { %v428_v60 = vadd.f32 %v426_v59, %v418_v58 }
 0x48e   :  { %1820 = vtanh.f32 %v428_v60 }
 0x49b   :  { %v1821_v61 = vpop.eup %1820 }
 0x49c   :  { %431 = vrot.lane.b32.xlu0 %v1821_v61, %s1919_s0 }
 0x50e   :  { %v432_v62 = vpop.permute.xlu0 %431 }
 0x50f   :  { %v434_v63 = vmul.f32 %v1819_v55, %v432_v62 }
 0x511   :  { %436 = vrot.lane.b32.xlu1 %v434_v63, %s1920_s7 }
 0x583   :  { %v437_v1 = vpop.permute.xlu1 %436 }
 0x584   :  { %1616 = vmatmul.mubr.msk.f32.vlgmr.msra.gmra.mxu0 %vm236_vm2, %v437_v1 }
 0x585   :  { %1630 = vmatpush3.msra.mxu0 %v1955_v4  ;;  %1637 = vmatprep.mubr.msk.f32.mxu0 %vm1918_vm0, %v1917_v0 }
 0x586   :  { %1631 = vmatprep.subr.mxu0 %v1917_v0 }
 0x587   :  { %1632 = vmatpush3.msra.mxu0 %v1963_v6 }
 0x588   :  { %1633 = vmatprep.subr.mxu0 %v1917_v0 }
 0x589   :  { %1634 = vmatpush3.msra.mxu0 %v1974_v9 }
 0x58a   :  { %1635 = vmatprep.subr.mxu0 %v1917_v0 }
 0x58b   :  { %1636 = vmatpush3.msra.mxu0 %v1981_v10 }
 0x58c   :  { %1651 = vmatprep.subr.mxu0 %v1917_v0 }
 0x644   :  { %v506_v2 = vpop.f32.mrf.mxu0 }
 0x645   :  { %v510_v3 = vadd.f32 %v506_v2, %v2020_v21 }
 0x646   :  { %v1617_v5 = vpop.f32.mrf.mxu0 }
 0x647   :  { %1822 = vtanh.f32 %v510_v3  ;;  %v1445_v8 = vmul.f32 -1.442695, %v510_v3 }
 0x649   :  { %1824 = vpow2.f32 %v1445_v8 }
 0x654   :  { %v1823_v7 = vpop.eup %1822 }
 0x655   :  { %520 = vrot.lane.b32.xlu0 %v1823_v7, %s1919_s0 }
 0x656   :  { %v1825_v11 = vpop.eup %1824 }
 0x657   :  { %v514_v12 = vadd.f32 1.0, %v1825_v11 }
 0x659   :  { %1826 = vrcp.f32 %v514_v12 }
 0x666   :  { %v1827_v13 = vpop.eup %1826 }
 0x667   :  { %v518_v16 = vmul.f32 %v1827_v13, %v428_v60 }
 0x6c7   :  { %v521_v14 = vpop.permute.xlu0 %520 }
 0x6c8   :  { %v523_v15 = vmul.f32 %v1827_v13, %v521_v14 }
 0x6ca   :  { %525 = vrot.lane.b32.xlu1 %v523_v15, %s1919_s0 }
 0x73c   :  { %v526_v17 = vpop.permute.xlu1 %525 }
 0x73d   :  { %v528_v18 = vadd.f32 %v526_v17, %v518_v16 }
 0x73f   :  { %1828 = vtanh.f32 %v528_v18 }
 0x74c   :  { %v1829_v20 = vpop.eup %1828 }
 0x74d   :  { %531 = vrot.lane.b32.xlu0 %v1829_v20, %s1919_s0 }
 0x7bf   :  { %v532_v21 = vpop.permute.xlu0 %531 }
 0x7c0   :  { %v534_v22 = vmul.f32 %v1827_v13, %v532_v21 }
 0x7c2   :  { %536 = vrot.lane.b32.xlu1 %v534_v22, %s1920_s7 }
 0x834   :  { %v537_v24 = vpop.permute.xlu1 %536 }
 0x835   :  { %1627 = vmatmul.mubr.msk.f32.vlgmr.msra.gmra.mxu1 %vm236_vm2, %v537_v24 }
 0x836   :  { %1641 = vmatpush3.msra.mxu1 %v1955_v4  ;;  %1648 = vmatprep.mubr.msk.f32.mxu1 %vm1918_vm0, %v1917_v0 }
 0x837   :  { %1642 = vmatprep.subr.mxu1 %v1917_v0 }
 0x838   :  { %1643 = vmatpush3.msra.mxu1 %v1963_v6 }
 0x839   :  { %1644 = vmatprep.subr.mxu1 %v1917_v0 }
 0x83a   :  { %1645 = vmatpush3.msra.mxu1 %v1974_v9 }
 0x83b   :  { %1646 = vmatprep.subr.mxu1 %v1917_v0 }
 0x83c   :  { %1647 = vmatpush3.msra.mxu1 %v1981_v10 }
 0x83d   :  { %1662 = vmatprep.subr.mxu1 %v1917_v0 }
 0x8f5   :  { %v606_v26 = vpop.f32.mrf.mxu1 }
 0x8f6   :  { %v610_v28 = vadd.f32 %v606_v26, %v2018_v19 }
 0x8f7   :  { %v1628_v29 = vpop.f32.mrf.mxu1 }
 0x8f8   :  { %1830 = vtanh.f32 %v610_v28  ;;  %v1447_v32 = vmul.f32 -1.442695, %v610_v28 }
 0x8fa   :  { %1832 = vpow2.f32 %v1447_v32  ;;  %v36_v32 = vld [vmem:[#allocation2 + $0x38] sm:$0xff] }
 0x905   :  { %v1831_v31 = vpop.eup %1830 }
 0x906   :  { %620 = vrot.lane.b32.xlu0 %v1831_v31, %s1919_s0  ;;  %v37_v31 = vld [vmem:[#allocation2 + $0x40] sm:$0xff] }
 0x907   :  { %v1833_v33 = vpop.eup %1832 }
 0x908   :  { %v614_v34 = vadd.f32 1.0, %v1833_v33  ;;  %v35_v33 = vld [vmem:[#allocation2 + $0x30] sm:$0xff] }
 0x90a   :  { %1834 = vrcp.f32 %v614_v34  ;;  %v1035_v34 = vld [vmem:[%s2205_s1] sm:$0xff]  ;;  %s1921_s1 = smov [#allocation5]  }
 0x90b   :  { %s1423_s10 = sshll.u32 %s1921_s1, 4  ;;  %s1424_s10 = int_to_ptr.vmem [resolvable:$true] %s1423_s10 }
 0x90c   :  { %s1890_s11 = scalar_lea.vmem %s1424_s10, 128  ;;  %p1895_p6 = scmp.lt.s32.totalorder %s1424_s10, %s1424_s10 }
 0x90d   :  { %p1891_p5 = scmp.ne.s32.totalorder %s1424_s10, %s1890_s11  ;;  %p1896_p7 = scmp.lt.s32.totalorder %s1890_s11, %s1890_s11 }
 0x90f   :  { %p1897_p8 = por %p1896_p7, %p1895_p6 }
 0x911   :  { %p1898_p9 = pnand %p1897_p8, %p1891_p5 }
 0x917   :  { %v1835_v35 = vpop.eup %1834 }
 0x918   :  { %v618_v38 = vmul.f32 %v1835_v35, %v528_v18 }
 0x978   :  { %v621_v36 = vpop.permute.xlu0 %620 }
 0x979   :  { %v623_v37 = vmul.f32 %v1835_v35, %v621_v36 }
 0x97b   :  { %625 = vrot.lane.b32.xlu1 %v623_v37, %s1919_s0 }
 0x9ed   :  { %v626_v39 = vpop.permute.xlu1 %625 }
 0x9ee   :  { %v628_v40 = vadd.f32 %v626_v39, %v618_v38  ;;  %v54_v38 = vld [vmem:[#allocation2 + $0xc8] sm:$0xff]  ;;  %v53_v39 = vld [vmem:[#allocation2 + $0xc0] sm:$0xff] }
 0x9f0   :  { %1836 = vtanh.f32 %v628_v40 }
 0x9fd   :  { %v1837_v19 = vpop.eup %1836 }
 0x9fe   :  { %631 = vrot.lane.b32.xlu0 %v1837_v19, %s1919_s0  ;;  %v52_v19 = vld [vmem:[#allocation2 + $0xb8] sm:$0xff] }
 0xa70   :  { %v632_v41 = vpop.permute.xlu0 %631 }
 0xa71   :  { %v634_v42 = vmul.f32 %v1835_v35, %v632_v41 }
 0xa73   :  { %636 = vrot.lane.b32.xlu1 %v634_v42, %s1920_s7  ;;  %v51_v42 = vld [vmem:[#allocation2 + $0xb0] sm:$0xff] }
 0xae5   :  { %v637_v43 = vpop.permute.xlu1 %636 }
 0xae6   :  { %1638 = vmatmul.mubr.msk.f32.vlgmr.msra.gmra.mxu0 %vm236_vm2, %v637_v43  ;;  %v50_v43 = vld [vmem:[#allocation2 + $0xa8] sm:$0xff] }
 0xae7   :  { %1652 = vmatpush3.msra.mxu0 %v1955_v4  ;;  %1659 = vmatprep.mubr.msk.f32.mxu0 %vm1918_vm0, %v1917_v0 }
 0xae8   :  { %1653 = vmatprep.subr.mxu0 %v1917_v0 }
 0xae9   :  { %1654 = vmatpush3.msra.mxu0 %v1963_v6 }
 0xaea   :  { %1655 = vmatprep.subr.mxu0 %v1917_v0 }
 0xaeb   :  { %1656 = vmatpush3.msra.mxu0 %v1974_v9 }
 0xaec   :  { %1657 = vmatprep.subr.mxu0 %v1917_v0 }
 0xaed   :  { %1658 = vmatpush3.msra.mxu0 %v1981_v10 }
 0xaee   :  { %1673 = vmatprep.subr.mxu0 %v1917_v0 }
 0xba6   :  { %v706_v44 = vpop.f32.mrf.mxu0 }
 0xba7   :  { %v710_v45 = vadd.f32 %v706_v44, %v2024_v25  ;;  %v49_v44 = vld [vmem:[#allocation2 + $0xa0] sm:$0xff] }
 0xba8   :  { %v1639_v46 = vpop.f32.mrf.mxu0 }
 0xba9   :  { %1838 = vtanh.f32 %v710_v45  ;;  %v1449_v48 = vmul.f32 -1.442695, %v710_v45  ;;  %v48_v45 = vld [vmem:[#allocation2 + $0x98] sm:$0xff]  ;;  %v47_v46 = vld [vmem:[#allocation2 + $0x90] sm:$0xff] }
 0xbab   :  { %1840 = vpow2.f32 %v1449_v48  ;;  %v45_v48 = vld [vmem:[#allocation2 + $0x80] sm:$0xff] }
 0xbb6   :  { %v1839_v47 = vpop.eup %1838 }
 0xbb7   :  { %720 = vrot.lane.b32.xlu0 %v1839_v47, %s1919_s0  ;;  %v46_v47 = vld [vmem:[#allocation2 + $0x88] sm:$0xff] }
 0xbb8   :  { %v1841_v49 = vpop.eup %1840 }
 0xbb9   :  { %v714_v50 = vadd.f32 1.0, %v1841_v49  ;;  %v44_v49 = vld [vmem:[#allocation2 + $0x78] sm:$0xff] }
 0xbbb   :  { %1842 = vrcp.f32 %v714_v50  ;;  %v43_v50 = vld [vmem:[#allocation2 + $0x70] sm:$0xff] }
 0xbc8   :  { %v1843_v51 = vpop.eup %1842 }
 0xbc9   :  { %v718_v54 = vmul.f32 %v1843_v51, %v628_v40 }
 0xc29   :  { %v721_v52 = vpop.permute.xlu0 %720 }
 0xc2a   :  { %v723_v53 = vmul.f32 %v1843_v51, %v721_v52  ;;  %v42_v52 = vld [vmem:[#allocation2 + $0x68] sm:$0xff] }
 0xc2c   :  { %725 = vrot.lane.b32.xlu1 %v723_v53, %s1919_s0 }
 0xc9e   :  { %v726_v55 = vpop.permute.xlu1 %725 }
 0xc9f   :  { %v728_v56 = vadd.f32 %v726_v55, %v718_v54  ;;  %v41_v54 = vld [vmem:[#allocation2 + $0x60] sm:$0xff]  ;;  %v40_v55 = vld [vmem:[#allocation2 + $0x58] sm:$0xff] }
 0xca1   :  { %1844 = vtanh.f32 %v728_v56 }
 0xcae   :  { %v1845_v25 = vpop.eup %1844 }
 0xcaf   :  { %731 = vrot.lane.b32.xlu0 %v1845_v25, %s1919_s0  ;;  %v39_v25 = vld [vmem:[#allocation2 + $0x50] sm:$0xff] }
 0xd21   :  { %v732_v57 = vpop.permute.xlu0 %731 }
 0xd22   :  { %v734_v58 = vmul.f32 %v1843_v51, %v732_v57  ;;  %v1456_v51 = vld [vmem:[#allocation2 + $0x48] ss:$0 sm:$0xff] }
 0xd24   :  { %736 = vrot.lane.b32.xlu1 %v734_v58, %s1920_s7 }
 0xd96   :  { %v737_v59 = vpop.permute.xlu1 %736 }
 0xd97   :  { %1649 = vmatmul.mubr.msk.f32.vlgmr.msra.gmra.mxu1 %vm236_vm2, %v737_v59 }
 0xd98   :  { %1663 = vmatpush3.msra.mxu1 %v1955_v4  ;;  %1670 = vmatprep.mubr.msk.f32.mxu1 %vm1918_vm0, %v1917_v0 }
 0xd99   :  { %1664 = vmatprep.subr.mxu1 %v1917_v0 }
 0xd9a   :  { %1665 = vmatpush3.msra.mxu1 %v1963_v6 }
 0xd9b   :  { %1666 = vmatprep.subr.mxu1 %v1917_v0 }
 0xd9c   :  { %1667 = vmatpush3.msra.mxu1 %v1974_v9 }
 0xd9d   :  { %1668 = vmatprep.subr.mxu1 %v1917_v0 }
 0xd9e   :  { %1669 = vmatpush3.msra.mxu1 %v1981_v10 }
 0xd9f   :  { %1717 = vmatprep.subr.mxu1 %v1917_v0 }
 0xe57   :  { %v806_v60 = vpop.f32.mrf.mxu1 }
 0xe58   :  { %v810_v4 = vadd.f32 %v806_v60, %v2022_v23 }
 0xe59   :  { %v1650_v61 = vpop.f32.mrf.mxu1 }
 0xe5a   :  { %1846 = vtanh.f32 %v810_v4  ;;  %v1451_v63 = vmul.f32 -1.442695, %v810_v4 }
 0xe5c   :  { %1848 = vpow2.f32 %v1451_v63 }
 0xe67   :  { %v1847_v62 = vpop.eup %1846 }
 0xe68   :  { %820 = vrot.lane.b32.xlu0 %v1847_v62, %s1919_s0 }
 0xe69   :  { %v1849_v6 = vpop.eup %1848 }
 0xe6a   :  { %v814_v1 = vadd.f32 1.0, %v1849_v6 }
 0xe6c   :  { %1850 = vrcp.f32 %v814_v1 }
 0xe79   :  { %v1851_v9 = vpop.eup %1850 }
 0xe7a   :  { %v818_v10 = vmul.f32 %v1851_v9, %v728_v56 }
 0xeda   :  { %v821_v2 = vpop.permute.xlu0 %820 }
 0xedb   :  { %v823_v3 = vmul.f32 %v1851_v9, %v821_v2  ;;  %v70_v2 = vld [vmem:[#allocation2 + $0x148] sm:$0xff] }
 0xedd   :  { %825 = vrot.lane.b32.xlu1 %v823_v3, %s1919_s0  ;;  %v69_v3 = vld [vmem:[#allocation2 + $0x140] sm:$0xff] }
 0xf4f   :  { %v826_v5 = vpop.permute.xlu1 %825 }
 0xf50   :  { %v828_v7 = vadd.f32 %v826_v5, %v818_v10  ;;  %v68_v5 = vld [vmem:[#allocation2 + $0x138] sm:$0xff] }
 0xf52   :  { %1852 = vtanh.f32 %v828_v7 }
 0xf5f   :  { %v1853_v23 = vpop.eup %1852 }
 0xf60   :  { %831 = vrot.lane.b32.xlu0 %v1853_v23, %s1919_s0  ;;  %v66_v23 = vld [vmem:[#allocation2 + $0x128] sm:$0xff] }
 0xfd2   :  { %v832_v8 = vpop.permute.xlu0 %831 }
 0xfd3   :  { %v834_v11 = vmul.f32 %v1851_v9, %v832_v8  ;;  %v71_v9 = vld [vmem:[#allocation2 + $0x150] sm:$0xff]  ;;  %v65_v8 = vld [vmem:[#allocation2 + $0x120] sm:$0xff] }
 0xfd5   :  { %836 = vrot.lane.b32.xlu1 %v834_v11, %s1920_s7  ;;  %v64_v11 = vld [vmem:[#allocation2 + $0x118] sm:$0xff] }
0x1047   :  { %v837_v12 = vpop.permute.xlu1 %836 }
0x1048   :  { %1660 = vmatmul.mubr.msk.f32.vlgmr.msra.gmra.mxu0 %vm236_vm2, %v837_v12  ;;  %v63_v12 = vld [vmem:[#allocation2 + $0x110] sm:$0xff] }
0x1049   :  { %1679 = vmatprep.mubr.msk.f32.mxu0 %vm1918_vm0, %v1917_v0  ;;  %1674 = vmatpush3.msra.mxu0 %v37_v31  ;;  %v92_v31 = vld [vmem:[#allocation2 + $0x1f8] sm:$0xff] }
0x104a   :  { %1675 = vmatprep.subr.mxu0 %v1917_v0 }
0x104b   :  { %1676 = vmatpush3.msra.mxu0 %v36_v32  ;;  %v91_v32 = vld [vmem:[#allocation2 + $0x1f0] sm:$0xff] }
0x104c   :  { %1677 = vmatprep.subr.mxu0 %v1917_v0 }
0x104d   :  { %1678 = vmatpush3.msra.mxu0 %v35_v33  ;;  %v90_v33 = vld [vmem:[#allocation2 + $0x1e8] sm:$0xff] }
0x104e   :  { %1680 = vmatmul.mubr.msk.f32.vlgmr.msra.gmra.mxu0 %vm1040_vm3, %v1035_v34  ;;  %1682 = vmatprep.subr.mxu0 %v1917_v0  ;;  %v89_v34 = vld [vmem:[#allocation2 + $0x1e0] sm:$0xff] }
0x104f   :  { %1714 = vmatprep.mubr.msk.f32.mxu0 %vm1918_vm0, %v1917_v0  ;;  %1683 = vmatpush3.msra.mxu0 %v54_v38  ;;  %v87_v38 = vld [vmem:[#allocation2 + $0x1d0] sm:$0xff] }
0x1050   :  { %1684 = vmatprep.subr.mxu0 %v1917_v0 }
0x1051   :  { %1685 = vmatpush3.msra.mxu0 %v53_v39  ;;  %v73_v39 = vld [vmem:[#allocation2 + $0x160] sm:$0xff] }
0x1052   :  { %1686 = vmatprep.subr.mxu0 %v1917_v0 }
0x1053   :  { %1687 = vmatpush3.msra.mxu0 %v52_v19  ;;  %v86_v19 = vld [vmem:[#allocation2 + $0x1c8] sm:$0xff] }
0x1054   :  { %1688 = vmatprep.subr.mxu0 %v1917_v0 }
0x1055   :  { %1689 = vmatpush3.msra.mxu0 %v51_v42  ;;  %v84_v42 = vld [vmem:[#allocation2 + $0x1b8] sm:$0xff] }
0x1056   :  { %1690 = vmatprep.subr.mxu0 %v1917_v0 }
0x1057   :  { %1691 = vmatpush3.msra.mxu0 %v50_v43  ;;  %v83_v43 = vld [vmem:[#allocation2 + $0x1b0] sm:$0xff] }
0x1058   :  { %1692 = vmatprep.subr.mxu0 %v1917_v0 }
0x1059   :  { %1693 = vmatpush3.msra.mxu0 %v49_v44  ;;  %v82_v44 = vld [vmem:[#allocation2 + $0x1a8] sm:$0xff] }
0x105a   :  { %1694 = vmatprep.subr.mxu0 %v1917_v0 }
0x105b   :  { %1695 = vmatpush3.msra.mxu0 %v48_v45  ;;  %v81_v45 = vld [vmem:[#allocation2 + $0x1a0] sm:$0xff] }
0x105c   :  { %1696 = vmatprep.subr.mxu0 %v1917_v0 }
0x105d   :  { %1697 = vmatpush3.msra.mxu0 %v47_v46  ;;  %v80_v46 = vld [vmem:[#allocation2 + $0x198] sm:$0xff] }
0x105e   :  { %1698 = vmatprep.subr.mxu0 %v1917_v0 }
0x105f   :  { %1699 = vmatpush3.msra.mxu0 %v46_v47  ;;  %v79_v47 = vld [vmem:[#allocation2 + $0x190] sm:$0xff] }
0x1060   :  { %1700 = vmatprep.subr.mxu0 %v1917_v0 }
0x1061   :  { %1701 = vmatpush3.msra.mxu0 %v45_v48  ;;  %v78_v48 = vld [vmem:[#allocation2 + $0x188] sm:$0xff] }
0x1062   :  { %1702 = vmatprep.subr.mxu0 %v1917_v0 }
0x1063   :  { %1703 = vmatpush3.msra.mxu0 %v44_v49  ;;  %v77_v49 = vld [vmem:[#allocation2 + $0x180] sm:$0xff] }
0x1064   :  { %1704 = vmatprep.subr.mxu0 %v1917_v0 }
0x1065   :  { %1705 = vmatpush3.msra.mxu0 %v43_v50  ;;  %v1459_v50 = vld [vmem:[#allocation2 + $0x158] ss:$0 sm:$0xff] }
0x1066   :  { %1706 = vmatprep.subr.mxu0 %v1917_v0 }
0x1067   :  { %1707 = vmatpush3.msra.mxu0 %v42_v52 }
0x1068   :  { %1708 = vmatprep.subr.mxu0 %v1917_v0 }
0x1069   :  { %1709 = vmatpush3.msra.mxu0 %v41_v54 }
0x106a   :  { %1710 = vmatprep.subr.mxu0 %v1917_v0 }
0x106b   :  { %1711 = vmatpush3.msra.mxu0 %v40_v55 }
0x106c   :  { %1712 = vmatprep.subr.mxu0 %v1917_v0 }
0x106d   :  { %1713 = vmatpush3.msra.mxu0 %v39_v25 }
0x106e   :  { %1752 = vmatprep.subr.mxu0 %v1917_v0 }
0x1108   :  { %v906_v13 = vpop.f32.mrf.mxu0 }
0x1109   :  { %v910_v14 = vadd.f32 %v906_v13, %v2028_v30  ;;  %v62_v13 = vld [vmem:[#allocation2 + $0x108] sm:$0xff] }
0x110a   :  { %v1661_v15 = vpop.f32.mrf.mxu0 }
0x110b   :  { %1854 = vtanh.f32 %v910_v14  ;;  %v1453_v17 = vmul.f32 -1.442695, %v910_v14  ;;  %v61_v14 = vld [vmem:[#allocation2 + $0x100] sm:$0xff]  ;;  %v60_v15 = vld [vmem:[#allocation2 + $0xf8] sm:$0xff] }
0x110d   :  { %1856 = vpow2.f32 %v1453_v17  ;;  %v59_v17 = vld [vmem:[#allocation2 + $0xf0] sm:$0xff] }
0x110e   :  { %v1110_v40 = vpop.f32.mrf.mxu0 }
0x110f   :  { %v1111_v53 = vadd.f32 %v1456_v51, %v1110_v40 }
0x1110   :  { %v1681_v41 = vpop.f32.mrf.mxu0 }
0x1111   :  { %v1114_v56 = vmax.f32 %v1111_v53, 0.0  ;;  %v85_v41 = vld [vmem:[#allocation2 + $0x1c0] sm:$0xff] }
0x1113   :  { %1715 = vmatmul.mubr.f32.vlgmr.msra.gmra.mxu0 %v1114_v56 }
0x1114   :  { %1784 = vmatprep.mubr.msk.f32.mxu0 %vm1918_vm0, %v1917_v0  ;;  %1753 = vmatpush3.msra.mxu0 %v92_v31 }
0x1115   :  { %1754 = vmatprep.subr.mxu0 %v1917_v0 }
0x1116   :  { %1755 = vmatpush3.msra.mxu0 %v91_v32 }
0x1117   :  { %1756 = vmatprep.subr.mxu0 %v1917_v0 }
0x1118   :  { %v1855_v16 = vpop.eup %1854  ;;  %1757 = vmatpush3.msra.mxu0 %v90_v33 }
0x1119   :  { %920 = vrot.lane.b32.xlu0 %v1855_v16, %s1919_s0  ;;  %v1458_v16 = vld [vmem:[#allocation2 + $0xd0] ss:$0 sm:$0xff]  ;;  %1758 = vmatprep.subr.mxu0 %v1917_v0 }
0x111a   :  { %v1857_v18 = vpop.eup %1856  ;;  %1759 = vmatpush3.msra.mxu0 %v89_v34 }
0x111b   :  { %v914_v20 = vadd.f32 1.0, %v1857_v18  ;;  %1760 = vmatprep.subr.mxu0 %v1917_v0 }
0x111d   :  { %1858 = vrcp.f32 %v914_v20  ;;  %v58_v20 = vld [vmem:[#allocation2 + $0xe8] sm:$0xff] }
0x112a   :  { %v1859_v21 = vpop.eup %1858 }
0x112b   :  { %v918_v26 = vmul.f32 %v1859_v21, %v828_v7  ;;  %v67_v7 = vld [vmem:[#allocation2 + $0x130] sm:$0xff] }
0x118b   :  { %v921_v22 = vpop.permute.xlu0 %920 }
0x118c   :  { %v923_v24 = vmul.f32 %v1859_v21, %v921_v22 }
0x118e   :  { %925 = vrot.lane.b32.xlu1 %v923_v24, %s1919_s0  ;;  %v56_v24 = vld [vmem:[#allocation2 + $0xd8] sm:$0xff] }
0x1200   :  { %v926_v28 = vpop.permute.xlu1 %925 }
0x1201   :  { %v2119_v29 = vadd.f32 %v926_v28, %v918_v26 }
0x1203   :  { %1860 = vtanh.f32 %v2119_v29 }
0x1210   :  { %v1861_v30 = vpop.eup %1860 }
0x1211   :  { %931 = vrot.lane.b32.xlu0 %v1861_v30, %s1919_s0 }
0x1283   :  { %v932_v35 = vpop.permute.xlu0 %931 }
0x1284   :  { %v934_v36 = vmul.f32 %v1859_v21, %v932_v35  ;;  %v57_v21 = vld [vmem:[#allocation2 + $0xe0] sm:$0xff]  ;;  %v76_v35 = vld [vmem:[#allocation2 + $0x178] sm:$0xff] }
0x1286   :  { %936 = vrot.lane.b32.xlu1 %v934_v36, %s1920_s7  ;;  %v75_v36 = vld [vmem:[#allocation2 + $0x170] sm:$0xff] }
0x12f8   :  { %v937_v37 = vpop.permute.xlu1 %936 }
0x12f9   :  { %1671 = vmatmul.mubr.msk.f32.vlgmr.msra.gmra.mxu1 %vm236_vm2, %v937_v37  ;;  %v74_v37 = vld [vmem:[#allocation2 + $0x168] sm:$0xff] }
0x12fa   :  { %1749 = vmatprep.mubr.msk.f32.mxu1 %vm1918_vm0, %v1917_v0  ;;  %1718 = vmatpush3.msra.mxu1 %v71_v9 }
0x12fb   :  { %1719 = vmatprep.subr.mxu1 %v1917_v0 }
0x12fc   :  { %1720 = vmatpush3.msra.mxu1 %v70_v2 }
0x12fd   :  { %1721 = vmatprep.subr.mxu1 %v1917_v0 }
0x12fe   :  { %1722 = vmatpush3.msra.mxu1 %v69_v3 }
0x12ff   :  { %1723 = vmatprep.subr.mxu1 %v1917_v0 }
0x1300   :  { %1724 = vmatpush3.msra.mxu1 %v68_v5 }
0x1301   :  { %1725 = vmatprep.subr.mxu1 %v1917_v0 }
0x1302   :  { %1726 = vmatpush3.msra.mxu1 %v67_v7 }
0x1303   :  { %1727 = vmatprep.subr.mxu1 %v1917_v0 }
0x1304   :  { %1728 = vmatpush3.msra.mxu1 %v66_v23 }
0x1305   :  { %1729 = vmatprep.subr.mxu1 %v1917_v0 }
0x1306   :  { %1730 = vmatpush3.msra.mxu1 %v65_v8 }
0x1307   :  { %1731 = vmatprep.subr.mxu1 %v1917_v0 }
0x1308   :  { %1732 = vmatpush3.msra.mxu1 %v64_v11 }
0x1309   :  { %1733 = vmatprep.subr.mxu1 %v1917_v0 }
0x130a   :  { %1734 = vmatpush3.msra.mxu1 %v63_v12 }
0x130b   :  { %1735 = vmatprep.subr.mxu1 %v1917_v0 }
0x130c   :  { %1736 = vmatpush3.msra.mxu1 %v62_v13 }
0x130d   :  { %1737 = vmatprep.subr.mxu1 %v1917_v0 }
0x130e   :  { %1738 = vmatpush3.msra.mxu1 %v61_v14 }
0x130f   :  { %1739 = vmatprep.subr.mxu1 %v1917_v0 }
0x1310   :  { %1740 = vmatpush3.msra.mxu1 %v60_v15 }
0x1311   :  { %1741 = vmatprep.subr.mxu1 %v1917_v0 }
0x1312   :  { %1742 = vmatpush3.msra.mxu1 %v59_v17 }
0x1313   :  { %1743 = vmatprep.subr.mxu1 %v1917_v0 }
0x1314   :  { %1744 = vmatpush3.msra.mxu1 %v58_v20 }
0x1315   :  { %1745 = vmatprep.subr.mxu1 %v1917_v0 }
0x1316   :  { %1746 = vmatpush3.msra.mxu1 %v57_v21 }
0x1317   :  { %1747 = vmatprep.subr.mxu1 %v1917_v0 }
0x1318   :  { %1748 = vmatpush3.msra.mxu1 %v56_v24 }
0x1319   :  { %1787 = vmatprep.subr.mxu1 %v1917_v0 }
0x13b9   :  { %v1006_v57 = vpop.f32.mrf.mxu1 }
0x13ba   :  { %v1010_v58 = vadd.f32 %v1006_v57, %v2026_v27  ;;  %v1185_v27 = vpop.f32.mrf.mxu0 }
0x13bb   :  { %v1672_v59 = vpop.f32.mrf.mxu1  ;;  %v1186_v18 = vadd.f32 %v1458_v16, %v1185_v27 }
0x13bc   :  { %1862 = vtanh.f32 %v1010_v58  ;;  %v1455_v4 = vmul.f32 -1.442695, %v1010_v58  ;;  %v1716_v10 = vpop.f32.mrf.mxu0  ;;  %v1461_v59 = vld [vmem:[#allocation2 + $0x200] ss:$0 sm:$0xff] }
0x13bd   :  { %v1189_v22 = vmax.f32 %v1186_v18, 0.0 }
0x13be   :  { %1864 = vpow2.f32 %v1455_v4 }
0x13bf   :  { %1750 = vmatmul.mubr.f32.vlgmr.msra.gmra.mxu1 %v1189_v22 }
0x13c0   :  { %1795 = vmatprep.mubr.msk.f32.mxu1 %vm1918_vm0, %v1917_v0  ;;  %1788 = vmatpush3.msra.mxu1 %v76_v35 }
0x13c1   :  { %1789 = vmatprep.subr.mxu1 %v1917_v0 }
0x13c2   :  { %1790 = vmatpush3.msra.mxu1 %v75_v36 }
0x13c3   :  { %1791 = vmatprep.subr.mxu1 %v1917_v0 }
0x13c4   :  { %1792 = vmatpush3.msra.mxu1 %v74_v37 }
0x13c5   :  { %1793 = vmatprep.subr.mxu1 %v1917_v0 }
0x13c6   :  { %1794 = vmatpush3.msra.mxu1 %v73_v39 }
0x13c9   :  { %v1863_v60 = vpop.eup %1862 }
0x13ca   :  { %1020 = vrot.lane.b32.xlu0 %v1863_v60, %s1919_s0 }
0x13cb   :  { %v1865_v61 = vpop.eup %1864 }
0x13cc   :  { %v1014_v62 = vadd.f32 1.0, %v1865_v61 }
0x13ce   :  { %1866 = vrcp.f32 %v1014_v62 }
0x13db   :  { %v2155_v63 = vpop.eup %1866 }
0x13dc   :  { %v1018_v26 = vmul.f32 %v2155_v63, %v2119_v29  ;;  %v88_v29 = vld [vmem:[#allocation2 + $0x1d8] sm:$0xff] }
0x13dd   :  { %1761 = vmatpush3.msra.mxu0 %v88_v29 }
0x13de   :  { %1762 = vmatprep.subr.mxu0 %v1917_v0 }
0x13df   :  { %1763 = vmatpush3.msra.mxu0 %v87_v38 }
0x13e0   :  { %1764 = vmatprep.subr.mxu0 %v1917_v0 }
0x13e1   :  { %1765 = vmatpush3.msra.mxu0 %v86_v19 }
0x13e2   :  { %1766 = vmatprep.subr.mxu0 %v1917_v0 }
0x13e3   :  { %1767 = vmatpush3.msra.mxu0 %v85_v41 }
0x13e4   :  { %1768 = vmatprep.subr.mxu0 %v1917_v0 }
0x13e5   :  { %1769 = vmatpush3.msra.mxu0 %v84_v42 }
0x13e6   :  { %1770 = vmatprep.subr.mxu0 %v1917_v0 }
0x13e7   :  { %1771 = vmatpush3.msra.mxu0 %v83_v43 }
0x13e8   :  { %1772 = vmatprep.subr.mxu0 %v1917_v0 }
0x13e9   :  { %1773 = vmatpush3.msra.mxu0 %v82_v44 }
0x13ea   :  { %1774 = vmatprep.subr.mxu0 %v1917_v0 }
0x13eb   :  { %1775 = vmatpush3.msra.mxu0 %v81_v45 }
0x13ec   :  { %1776 = vmatprep.subr.mxu0 %v1917_v0 }
0x13ed   :  { %1777 = vmatpush3.msra.mxu0 %v80_v46 }
0x13ee   :  { %1778 = vmatprep.subr.mxu0 %v1917_v0 }
0x13ef   :  { %1779 = vmatpush3.msra.mxu0 %v79_v47 }
0x13f0   :  { %1780 = vmatprep.subr.mxu0 %v1917_v0 }
0x13f1   :  { %1781 = vmatpush3.msra.mxu0 %v78_v48 }
0x13f2   :  { %1782 = vmatprep.subr.mxu0 %v1917_v0 }
0x13f3   :  { %1783 = vmatpush3.msra.mxu0 %v77_v49 }
0x143c   :  { %v1021_v6 = vpop.permute.xlu0 %1020 }
0x143d   :  { %v1023_v1 = vmul.f32 %v2155_v63, %v1021_v6 }
0x143f   :  { %1025 = vrot.lane.b32.xlu1 %v1023_v1, %s1919_s0 }
0x147f   :  { %v1260_v51 = vpop.f32.mrf.mxu1 }
0x1480   :  { %v1261_v52 = vadd.f32 %v1459_v50, %v1260_v51 }
0x1481   :  { %v1751_v53 = vpop.f32.mrf.mxu1 }
0x1482   :  { %v1264_v54 = vmax.f32 %v1261_v52, 0.0 }
0x1484   :  { %1785 = vmatmul.mubr.f32.vlgmr.msra.gmra.mxu0 %v1264_v54 }
0x14b1   :  { %v1026_v28 = vpop.permute.xlu1 %1025 }
0x14b2   :  { %v1028_v30 = vadd.f32 %v1026_v28, %v1018_v26 }
0x14b4   :  { %1868 = vtanh.f32 %v1028_v30 }
0x14c1   :  { %v1869_v40 = vpop.eup %1868 }
0x14c2   :  { %1031 = vrot.lane.b32.xlu0 %v1869_v40, %s1919_s0 }
0x1534   :  { %v1032_v55 = vpop.permute.xlu0 %1031 }
0x1535   :  { %v1034_v56 = vmul.f32 %v2155_v63, %v1032_v55 }
0x1537   :  { %1336 = vrot.lane.b32.xlu1 %v1034_v56, %s1920_s7 }
0x1544   :  { %v1331_v57 = vpop.f32.mrf.mxu0 }
0x1546   :  { %v1786_v58 = vpop.f32.mrf.mxu0 }
0x15a9   :  { %v1337_v25 = vpop.permute.xlu1 %1336 }
0x15aa   :  { %1796 = vmatmul.mubr.msk.f32.vlgmr.msra.gmra.mxu1 %vm236_vm2, %v1337_v25 }
0x166a   :  { %v1406_v60 = vpop.f32.mrf.mxu1 }
0x166b   :  { %v1407_v0 = vadd.f32 %v1406_v60, %v1331_v57 }
0x166c   :  { %v1797_v4 = vpop.f32.mrf.mxu1 }
0x166d   :  { %v1414_v61 = vadd.f32 %v1461_v59, %v1407_v0 }
0x166f   :  { %v1415_v62 = vmax.f32 %v1414_v61, 0.0 }
0x1671   :  { %1416 = vst [vmem:[#allocation5] sm:$0xff] %v1415_v62 }
0x1672   :  { %1901 = shalt.err (!%p1898_p9)
}
0x1673   :  { %1426 = dma.vmem_to_hbm [thread:$0]  %s1424_s10, 128, %s2207_s3, [#allocation4]  }
0x1674   :  { %1912 = dma.done.wait [#allocation4], 128  }
0x1675   :  { %1913 = vsyncadd [#allocation4], 4294967168 }
0x1676   :  { %1430 = vsyncpa [#allocation3], 1 }
0x1677   :  { %1431 = vsyncpa [#allocation4], 1 }

</bundles_post_ra>
